<compile_context>
chip_gen: v7x
topology: tpu7x:2x2x1
jax: 0.10.0
libtpu: 0.0.40
codegen_flags: <defaults>
</compile_context>

<pallas_src>
import jax
import jax.numpy as jnp
from jax.experimental import pallas as pl
from jax.experimental.pallas import tpu as pltpu


def _self_attention_kernel(e_ref, m_ref, out_ref):
    T = e_ref.shape[1]
    e = e_ref[...]                                    # (Bb, T, D), input dtype

    # ---- y = mean over the sequence axis -> (Bb, D) in f32 ------------------
    # Plain VPU/XLU reduction: the kernel is HBM-bound, so these slots are
    # idle filler; avoids materializing a ones-row and unit-row MXU pushes.
    y = jnp.sum(e, axis=1, dtype=jnp.float32) * (1.0 / T)        # (Bb, D)

    # ---- d_temp[b, i] = sum_j M[i, j] * y[b, j] -- one 2-D MXU matmul -------
    d_temp = jax.lax.dot_general(
        y, m_ref[...].astype(jnp.float32),
        (((1,), (1,)), ((), ())),
        preferred_element_type=jnp.float32)                      # (Bb, D)

    # ---- d[b, t] = <e[b, t, :], d_temp[b, :]>  batched on the MXU -----------
    # Keep the big e tile in its input dtype; only the tiny d_temp is cast.
    d = jax.lax.dot_general(
        d_temp[:, None, :].astype(e.dtype), e,
        (((2,), (2,)), ((0,), (0,))),
        preferred_element_type=jnp.float32)                      # (Bb, 1, T)

    # ---- numerically stable softmax over the sequence (lane) axis -----------
    # Exact normalization (no approx reciprocal): rows must sum to 1 and the
    # divide is free in an HBM-bound kernel.  All softmax math stays in f32
    # (fast path on v5e, indifferent on v6e/v7x).
    d_max = jnp.max(d, axis=-1, keepdims=True)
    p = jnp.exp(d - d_max)
    denom = jnp.sum(p, axis=-1, keepdims=True)
    out_ref[...] = (p / denom).astype(out_ref.dtype)


def _vmem_limit_bytes():
    """Per-generation VMEM budget: ~0.75x physical capacity.

    ~96 MiB on v5e/v6e (128 MiB physical), ~48 MiB/core on v7x (64 MiB/TC).
    Falls back to a conservative 32 MiB when the query is unavailable
    (e.g. interpret mode off-TPU).
    """
    try:
        cap = pltpu.get_tpu_info().vmem_capacity_bytes
        return max(32 * 1024 * 1024, int(cap) * 3 // 4)
    except Exception:
        return 32 * 1024 * 1024


def _choose_batch_tile(B, T, D, vmem_limit_bytes, itemsize):
    """Largest batch tile whose per-step footprint fits the VMEM budget.

    Does not require Bb to divide B (the wrapper pads the batch), keeps at
    least 2 grid steps whenever B >= 2 so the software pipeline (and the v7x
    megacore split) engages, and prefers an even number of grid steps so both
    v7x TensorCores get equal work.
    """
    budget = vmem_limit_bytes * 3 // 4        # headroom for compiler temps

    def step_bytes(bb):
        return (2 * bb * T * D * itemsize     # double-buffered e block
                + 2 * D * D * 4               # M block (revolving)
                + 2 * bb * T * 4              # double-buffered output block
                + 8 * bb * (T + D) * 4)       # small f32 temporaries

    bb = 1
    for cand in range(1, B + 1):              # step_bytes is monotonic in bb
        if step_bytes(cand) <= budget:
            bb = cand

    if B >= 2:
        bb = min(bb, pl.cdiv(B, 2))           # keep >= 2 grid steps

    steps = pl.cdiv(B, bb)
    if steps > 1 and steps % 2 == 1:          # even grid for v7x megacore
        bb = pl.cdiv(B, steps + 1)
    return max(bb, 1)


@jax.jit
def self_attention(e, M):
    B, T, D = e.shape
    assert M.shape == (D, D)

    vmem_limit_bytes = _vmem_limit_bytes()
    Bb = _choose_batch_tile(B, T, D, vmem_limit_bytes, e.dtype.itemsize)
    steps = pl.cdiv(B, Bb)
    B_pad = steps * Bb
    if B_pad != B:
        # Zero-pad awkward (prime/odd) batch sizes: padded rows yield a
        # harmless uniform softmax that is sliced away below.
        e = jnp.pad(e, ((0, B_pad - B), (0, 0), (0, 0)))

    out3 = pl.pallas_call(
        _self_attention_kernel,
        out_shape=jax.ShapeDtypeStruct((B_pad, 1, T), jnp.float32),
        grid_spec=pltpu.PrefetchScalarGridSpec(
            num_scalar_prefetch=0,
            grid=(steps,),
            in_specs=[
                pl.BlockSpec((Bb, T, D), lambda i: (i, 0, 0)),
                pl.BlockSpec((D, D), lambda i: (0, 0)),
            ],
            out_specs=pl.BlockSpec((Bb, 1, T), lambda i: (i, 0, 0)),
        ),
        compiler_params=pltpu.CompilerParams(
            dimension_semantics=("parallel",),
            vmem_limit_bytes=vmem_limit_bytes,
        ),
    )(e, M)
    # Wrapper-side squeeze / unpad is free layout plumbing in XLA; keeping the
    # kernel output 3-D keeps every in-kernel op lane-aligned.
    return out3.reshape(B_pad, T)[:B]


def _kaiming_uniform(key, shape):
    # torch.nn.init.kaiming_uniform_ default: a=0, fan_in = shape[1],
    # gain = sqrt(2), bound = gain * sqrt(3 / fan_in)
    fan_in = shape[1]
    bound = jnp.sqrt(2.0) * jnp.sqrt(3.0 / fan_in)
    return jax.random.uniform(key, shape, jnp.float32, -bound, bound)


def _reference(e, M):
    y = jnp.mean(e, axis=1)                     # (B, D)
    d_temp = jnp.einsum("ij,bj->bi", M, y)      # (B, D)
    d = jnp.einsum("btd,bd->bt", e, d_temp)     # (B, T)
    return jax.nn.softmax(d, axis=-1)


if __name__ == "__main__":
    key = jax.random.PRNGKey(0)
    k_e, k_m = jax.random.split(key)

    B, T, D = 2, 8, 32                      # (batch, seq, emb_dim)
    e = jax.random.normal(k_e, (B, T, D), dtype=jnp.float32)
    M = _kaiming_uniform(k_m, (D, D))       # deterministic init of self.M

    out = self_attention(e, M)
    jax.block_until_ready(out)

    ref = _reference(e, M)
    assert out.shape == (B, T)
    assert jnp.allclose(out, ref, atol=1e-4, rtol=1e-4), "mismatch vs reference"
    assert jnp.allclose(jnp.sum(out, axis=-1), 1.0, atol=1e-4), \
        "softmax rows must sum to 1"

    print("KERNEL_OK")
</pallas_src>

<mosaic_0001>
module attributes {stable_mosaic.version = 11 : i64} {
  func.func @_self_attention_kernel(%arg0: i32, %arg1: memref<1x8x32xf32, #tpu.memory_space<vmem>>, %arg2: memref<32x32xf32, #tpu.memory_space<vmem>>, %arg3: memref<1x1x8xf32, #tpu.memory_space<vmem>>) attributes {dimension_semantics = [#tpu.dimension_semantics<parallel>], iteration_bounds = array<i64: 2>, scalar_prefetch = 0 : i64, scratch_operands = 0 : i64, tpu.core_type = #tpu.core_type<tc>, window_params = [{transform_indices = @transform_0, window_bounds = array<i64: 1, 8, 32>}, {pipeline_mode = #tpu.pipeline_mode<synchronous>, transform_indices = @transform_1, window_bounds = array<i64: 32, 32>}, {transform_indices = @transform_2, window_bounds = array<i64: 1, 1, 8>}]} {
    %c0 = arith.constant 0 : index
    %c0_0 = arith.constant 0 : index
    %c0_1 = arith.constant 0 : index
    %0 = vector.load %arg1[%c0, %c0_0, %c0_1] : memref<1x8x32xf32, #tpu.memory_space<vmem>>, vector<1x8x32xf32>
    %cst = arith.constant dense<0.000000e+00> : vector<1x32xf32>
    %1 = vector.multi_reduction <add>, %0, %cst [1] : vector<1x8x32xf32> to vector<1x32xf32>
    %cst_2 = arith.constant 1.250000e-01 : f32
    %2 = vector.broadcast %cst_2 : f32 to vector<1x32xf32>
    %3 = arith.mulf %1, %2 : vector<1x32xf32>
    %c0_3 = arith.constant 0 : index
    %c0_4 = arith.constant 0 : index
    %4 = vector.load %arg2[%c0_3, %c0_4] : memref<32x32xf32, #tpu.memory_space<vmem>>, vector<32x32xf32>
    %cst_5 = arith.constant dense<0.000000e+00> : vector<1x32xf32>
    %5 = tpu.matmul %3, %4, %cst_5 {dimension_numbers = #tpu.dot_dimension_numbers<[1], [1], [0], [0], [0, 0, 1, 0], [], []>} : vector<1x32xf32>, vector<32x32xf32>, vector<1x32xf32> -> vector<1x32xf32>
    %6 = vector.shape_cast %5 : vector<1x32xf32> to vector<1x1x32xf32>
    %cst_6 = arith.constant dense<0.000000e+00> : vector<1x1x8xf32>
    %7 = tpu.matmul %6, %0, %cst_6 {dimension_numbers = #tpu.dot_dimension_numbers<[2], [2], [1], [1], [0, 0, 0, 1, 1, 1], [0], [0]>} : vector<1x1x32xf32>, vector<1x8x32xf32>, vector<1x1x8xf32> -> vector<1x1x8xf32>
    %cst_7 = arith.constant dense<0xFF800000> : vector<1x1xf32>
    %8 = vector.multi_reduction <maximumf>, %7, %cst_7 [2] : vector<1x1x8xf32> to vector<1x1xf32>
    %9 = vector.shape_cast %8 : vector<1x1xf32> to vector<1x1x1xf32>
    %10 = vector.broadcast %9 : vector<1x1x1xf32> to vector<1x1x8xf32>
    %11 = arith.subf %7, %10 : vector<1x1x8xf32>
    %12 = math.exp %11 : vector<1x1x8xf32>
    %cst_8 = arith.constant dense<0.000000e+00> : vector<1x1xf32>
    %13 = vector.multi_reduction <add>, %12, %cst_8 [2] : vector<1x1x8xf32> to vector<1x1xf32>
    %14 = vector.shape_cast %13 : vector<1x1xf32> to vector<1x1x1xf32>
    %15 = vector.broadcast %14 : vector<1x1x1xf32> to vector<1x1x8xf32>
    %16 = arith.divf %12, %15 : vector<1x1x8xf32>
    %c0_9 = arith.constant 0 : index
    %c0_10 = arith.constant 0 : index
    %c0_11 = arith.constant 0 : index
    %17 = vector.load %arg3[%c0_9, %c0_10, %c0_11] : memref<1x1x8xf32, #tpu.memory_space<vmem>>, vector<1x1x8xf32>
    tpu.vector_store %arg3[%c0_9, %c0_10, %c0_11], %16 {strides = array<i32>} : memref<1x1x8xf32, #tpu.memory_space<vmem>>, vector<1x1x8xf32>,
    return
  }
  func.func @transform_0(%arg0: i32) -> (i32, i32, i32) {
    %c0_i32 = arith.constant 0 : i32
    %c0_i32_0 = arith.constant 0 : i32
    %c0_i32_1 = arith.constant 0 : i32
    return %arg0, %c0_i32, %c0_i32_0 : i32, i32, i32
  }
  func.func @transform_1(%arg0: i32) -> (i32, i32) {
    %c0_i32 = arith.constant 0 : i32
    %c0_i32_0 = arith.constant 0 : i32
    %c0_i32_1 = arith.constant 0 : i32
    return %c0_i32, %c0_i32_0 : i32, i32
  }
  func.func @transform_2(%arg0: i32) -> (i32, i32, i32) {
    %c0_i32 = arith.constant 0 : i32
    %c0_i32_0 = arith.constant 0 : i32
    %c0_i32_1 = arith.constant 0 : i32
    return %arg0, %c0_i32, %c0_i32_0 : i32, i32, i32
  }
}

</mosaic_0001>

<bundles_post_ra>
// kernel: self_attention.1
= control target key start
LH: loop header
LB: loop body
LE: loop exit
PB: predicated region body
PF: predicated region fallthrough
CT: control target
= control target key end

     0   :  { %7 = vsyncpa [#allocation3], 0  ;;  %s925_s0 = inlined_call_operand.hbm [shape: f32[2,8,32], index: 0, kind: input, shape index: {}]   ;;  %s926_s1 = inlined_call_operand.hbm [shape: f32[32,32], index: 1, kind: input, shape index: {}]   ;;  %s927_s2 = inlined_call_operand.hbm [shape: f32[2,1,8], index: 2, kind: output, shape index: {}]  }
   0x1   :  { %9 = vsyncpa [#allocation3 + $0x1], 0 }
   0x2   :  { %10 = vsyncpa [#allocation6], 0 }
   0x3   :  { %11 = vsyncpa [#allocation4], 0 }
   0x4   :  { %13 = vsyncpa [#allocation4 + $0x1], 0  ;;  %s719_s9 = smov 0   ;;  %s721_s10 = smov 0  }
   0x5   :  { %s723_s11 = smov 0   ;;  %s725_s12 = smov 0  }
   0x6 LB: > { %s740_s13 = sadd.s32 4294967295, %s694_s12   ;;  %s450_s14 = sadd.s32 4294967294, %s694_s12   ;;  %s694_s12 = sphi %s725_s12, %s947_s12   ;;  %s690_s11 = sphi %s723_s11, %s946_s11   ;;  %s686_s10 = sphi %s721_s10, %s945_s10   ;;  %s682_s9 = sphi %s719_s9, %s944_s9  }
   0x7   : > { %p39_p0 = scmp.ne.s32.totalorder %s686_s10, %s682_s9  ;;  %p928_p1 = scmp.eq.s32.totalorder %s740_s13, 0 }
   0x8   : > { %p90_p3 = scmp.eq.s32.totalorder %s450_s14, 1  ;;  %p451_p5 = scmp.ge.s32.totalorder %s694_s12, 1 }
   0x9   : > { %p749_p4 = por %p928_p1, %p39_p0  ;;  %p97_p7 = scmp.lt.s32.totalorder %s694_s12, 3 }
   0xa   : > { %p754_p6 = por %p90_p3, %p39_p0  ;;  %s696_s18 = smov [#allocation5]  }
   0xb   : > { %s931_s15 = scalar_select %p749_p4, 1, 0 }
   0xc   : > { %s932_s16 = scalar_select %p754_p6, 1, 0 }
   0xd   : > { %p759_p8 = pnand %p451_p5, %p97_p7  ;;  %s109_s19 = sshll.u32 %s696_s18, 4  ;;  %s763_s19 = int_to_ptr.vmem [resolvable:$true] %s109_s19 }
   0xe   : > { %s775_s21 = sadd.s32 1, %s694_s12   ;;  %s26_s22 = sadd.s32 1, %s690_s11 }
   0xf   : > { %s933_s17 = scalar_select %p759_p8, 1, 0 }
  0x10   : > { %p508_p9 = pneg %p759_p8  ;;  %s23_s23 = ssub.s32 %s694_s12, %s775_s21 }
  0x11   : > { %s566_s26 = scalar_lea.hbm %s926_s1, 512 }
  0x12   : > { %p770_p11 = pnand %p508_p9, %p928_p1  ;;  %p567_p12 = scmp.ne.s32.totalorder %s926_s1, %s566_s26 }
  0x13   : > { %p573_p5 = scmp.lt.u32.totalorder %s566_s26, %s926_s1 }
  0x14   : > { %p568_p13 = pneg %p770_p11 }
  0x16   : > { %p569_p0 = pnand %p568_p13, %p567_p12 }
  0x18   : > { %p570_p3 = pneg %p569_p0 }
  0x1a   : > { %p575_p7 = pnand %p573_p5, %p570_p3 }
  0x1c   : > { %578 = shalt.err (!%p575_p7)
}
  0x1d   : > { %s579_s3 = scalar_lea.vmem %s763_s19, 512  ;;  %p587_p2 = scmp.lt.s32.totalorder %s763_s19, %s763_s19 }
  0x1e   : > { %p580_p9 = scmp.ne.s32.totalorder %s763_s19, %s579_s3  ;;  %p588_p6 = scmp.lt.s32.totalorder %s579_s3, %s579_s3 }
  0x20   : > { %p582_p10 = pnand %p580_p9, %p568_p13  ;;  %p589_p4 = por %p588_p6, %p587_p2 }
  0x22   : > { %p583_p1 = pneg %p582_p10 }
  0x24   : > { %p590_p8 = pnand %p589_p4, %p583_p1 }
  0x26   : > { %593 = shalt.err (!%p590_p8)
}
  0x27   : > { %s697_s4 = smov 128   ;;  %s698_s5 = smov 8  }
  0x28   : > { %511 = dma.hbm_to_vmem [thread:$0]  (!%p770_p11), %s926_s1, 512, %s763_s19, [#allocation6], %s697_s4, %s697_s4, %s698_s5  }
  0x29   : > { %p24_p2 = scmp.eq.s32.totalorder %s23_s23, 0  ;;  %p33_p1 = scmp.ne.s32.totalorder %s690_s11, %s686_s10 }
  0x2a   : > { %p34_p4 = scmp.eq.s32.totalorder %s694_s12, 0  ;;  %p521_p6 = scmp.lt.s32.totalorder %s694_s12, 2 }
  0x2b   : > { %s806_s8 = scalar_select %p24_p2, %s690_s11, %s26_s22  }
  0x2c   : > { %p35_p8 = por %p34_p4, %p33_p1  ;;  %p935_p10 = scmp.eq.s32.totalorder %s740_s13, 1 }
  0x2d   : > { %s123_s18 = sand.u32 1, %s690_s11   ;;  %s455_s24 = sshll.u32 %s694_s12, 7 }
  0x2e   : > { %p810_p12 = por %p935_p10, %p33_p1  ;;  %s454_s25 = sshll.u32 %s123_s18, 3 }
  0x2f   : > { %s819_s27 = scalar_lea.hbm %s925_s0, %s455_s24  ;;  %s127_s19 = scalar_lea.vmem [#allocation2], %s454_s25 }
  0x30   : > { %s134_s22 = sshll.u32 %s127_s19, 4  ;;  %p821_p11 = pnand %p521_p6, %p35_p8  ;;  %s825_s22 = int_to_ptr.vmem [resolvable:$true] %s134_s22 }
  0x31   : > { %s124_s28 = scalar_lea.sflag [#allocation3], %s123_s18  ;;  %s594_s29 = scalar_lea.hbm %s819_s27, 128 }
  0x32   : > { %p595_p13 = scmp.ne.s32.totalorder %s819_s27, %s594_s29  ;;  %p596_p0 = pneg %p821_p11 }
  0x33   : > { %s599_s4 = scalar_lea.hbm %s925_s0, 256  ;;  %p600_p7 = scmp.lt.u32.totalorder %s819_s27, %s925_s0 }
  0x34   : > { %p597_p3 = pnand %p596_p0, %p595_p13  ;;  %p601_p9 = scmp.lt.u32.totalorder %s599_s4, %s594_s29 }
  0x35   : > { %p603_p1 = scmp.lt.u32.totalorder %s594_s29, %s819_s27 }
  0x36   : > { %p598_p5 = pneg %p597_p3  ;;  %p602_p2 = por %p601_p9, %p600_p7 }
  0x38   : > { %p604_p4 = por %p603_p1, %p602_p2 }
  0x3a   : > { %p605_p6 = pnand %p604_p4, %p598_p5 }
  0x3c   : > { %608 = shalt.err (!%p605_p6)
}
  0x3d   : > { %s609_s7 = scalar_lea.vmem %s825_s22, 128  ;;  %s699_s18 = smov [#allocation2]  }
  0x3e   : > { %p610_p8 = scmp.ne.s32.totalorder %s825_s22, %s609_s7  ;;  %s614_s24 = sshll.u32 %s699_s18, 4  ;;  %s615_s24 = int_to_ptr.vmem [resolvable:$false] %s614_s24 }
  0x3f   : > { %s616_s25 = scalar_lea.vmem %s615_s24, 256  ;;  %p617_p3 = scmp.lt.s32.totalorder %s825_s22, %s615_s24 }
  0x40   : > { %p612_p10 = pnand %p610_p8, %p596_p0  ;;  %p618_p7 = scmp.lt.s32.totalorder %s616_s25, %s609_s7 }
  0x42   : > { %p613_p13 = pneg %p612_p10  ;;  %p619_p9 = por %p618_p7, %p617_p3 }
  0x44   : > { %p620_p2 = pnand %p619_p9, %p613_p13 }
  0x46   : > { %623 = shalt.err (!%p620_p2)
}
  0x47   : > { %515 = dma.hbm_to_vmem [thread:$0]  (!%p821_p11), %s819_s27, 128, %s825_s22, %s124_s28  }
  0x48   : > { %p938_p5 = scmp.ne.s32.totalorder %s933_s17, 0 }
  0x49   : > { %s855_s20 = sand.u32 (!%p938_p5), 1, %s686_s10   ;;  %p939_p0 = scmp.ne.s32.totalorder (!%p938_p5), %s931_s15, 0 }
  0x4a   : > { %143 = sbr.rel (%p938_p5) target bundleno = 855 (0x357), region = 28  ;;  %s457_s26 = sshll.u32 (!%p938_p5), %s855_s20, 3 }
  0x4b   : > { %s146_s19 = scalar_lea.sflag (!%p938_p5), [#allocation3], %s855_s20  ;;  %s149_s29 = scalar_lea.vmem (!%p938_p5), [#allocation2], %s457_s26 }
  0x51   : > { %669 = dma.done.wait (%p939_p0), %s146_s19, 128  }
  0x52   : > { %671 = vsyncadd (%p939_p0), %s146_s19, 4294967168  ;;  %p940_p1 = scmp.eq.s32.totalorder %s740_s13, 0 }
  0x54   : > { %673 = dma.done.wait (%p940_p1), [#allocation6], 512   ;;  %p941_p11 = pmov %p940_p1 }
  0x55   : > { %v700_v0 = vmov 0.0|0.0   ;;  %vm701_vm0 = vmmov 0   ;;  %v702_v1 = vmov 0.0   ;;  %vm174_vm1 = vcmask 261120   ;;  %v183_v2 = vld [vmem:[#allocation5] sm:$0xff]  ;;  %v184_v3 = vld [vmem:[#allocation5 + $0x8] sm:$0xff] }
  0x56   : > { %675 = vsyncadd (%p941_p11), [#allocation6], 4294966784  ;;  %492 = vmatprep.subr.bf16.mxu0 %v700_v0  ;;  %484 = vmatprep.mubr.msk.f32.mxu0 %vm701_vm0, %v702_v1  ;;  %v493_v4 = vpack.c.bf16 %v184_v3, %v183_v2  ;;  %v173_v5 = vld [vmem:[%s149_s29] sm:$0xff]  ;;  %vm348_vm3 = vcmask 57344   ;;  %s466_s15 = sshll.u32 %s740_s13, 4  ;;  %s172_s17 = scalar_lea.vmem [#allocation7], %s855_s20 }
  0x57   : > { %487 = vmatprep.subr.mxu1 %v702_v1  ;;  %489 = vmatprep.mubr.msk.f32.mxu1 %vm701_vm0, %v702_v1  ;;  %vm494_vm2 = vmpackc.low %vm174_vm1, %vm174_vm1  ;;  %v175_v6 = vsel %vm174_vm1, %v173_v5, 0.0  ;;  %v185_v8 = vld [vmem:[#allocation5 + $0x10] sm:$0xff]  ;;  %v186_v9 = vld [vmem:[#allocation5 + $0x18] sm:$0xff]  ;;  %s374_s27 = sshll.u32 %s172_s17, 4  ;;  %s880_s28 = scalar_lea.hbm %s927_s2, %s466_s15  ;;  %s882_s27 = int_to_ptr.vmem [resolvable:$true] %s374_s27 }
  0x58   : > { %488 = vmatpush3.xpose.msk.msra.mxu1 %vm174_vm1, %v173_v5  ;;  %495 = vmatpush3.bf16.xpose.msk.msra.mxu0 %vm494_vm2, %v493_v4  ;;  %v176_v7 = vrot.slane %v175_v6, 4  ;;  %v497_v11 = vpack.c.bf16 %v186_v9, %v185_v8  ;;  %s362_s30 = scalar_lea.sflag [#allocation4], %s855_s20  ;;  %s624_s3 = scalar_lea.vmem %s882_s27, 16 }
  0x59   : > { %496 = vmatprep.subr.bf16.mxu0 %v700_v0  ;;  %p625_p4 = scmp.ne.s32.totalorder %s882_s27, %s624_s3  ;;  %s703_s13 = smov [#allocation7]  }
  0x5a   : > { %v177_v10 = vadd.f32 %v176_v7, %v175_v6  ;;  %s628_s4 = sshll.u32 %s703_s13, 4  ;;  %s629_s4 = int_to_ptr.vmem [resolvable:$false] %s628_s4 }
  0x5b   : > { %p626_p6 = pnand %p625_p4, %p810_p12  ;;  %s630_s5 = scalar_lea.vmem %s629_s4, 32 }
  0x5c   : > { %v178_v12 = vrot.slane %v177_v10, 2  ;;  %p631_p10 = scmp.lt.s32.totalorder %s882_s27, %s629_s4  ;;  %p632_p13 = scmp.lt.s32.totalorder %s630_s5, %s624_s3 }
  0x5d   : > { %p627_p8 = pneg %p626_p6 }
  0x5e   : > { %v179_v13 = vadd.f32 %v178_v12, %v177_v10  ;;  %p633_p3 = por %p632_p13, %p631_p10 }
  0x60   : > { %499 = vmatpush3.bf16.xpose.msk.msra.mxu0 %vm494_vm2, %v497_v11  ;;  %v180_v14 = vrot.slane %v179_v13, 1  ;;  %p634_p7 = pnand %p633_p3, %p627_p8 }
  0x62   : > { %v181_v15 = vadd.f32 %v180_v14, %v179_v13 }
  0x64   : > { %v182_v16 = vmul.f32 0.125, %v181_v15 }
  0x67   : > { %485 = vmatmul.mubr.msk.f32.vlgmr.msra.gmra.mrb[0].mxu0 %vm174_vm1, %v182_v16 }
 0x13a   : > { %v268_v17 = vpop.f32.mrb[0].mxu0 }
 0x13b   : > { %v486_v18 = vpop.f32.mrb[1].mxu0  ;;  %490 = vmatmul.mubr.msk.f32.vlgmr.msra.gmra.mrb[0].mxu1 %vm174_vm1, %v268_v17 }
 0x20e   : > { %v344_v19 = vpop.f32.mrb[0].mxu1 }
 0x20f   : > { %v491_v20 = vpop.f32.mrb[1].mxu1  ;;  %v349_v21 = vsel %vm348_vm3, %v344_v19, -inf }
 0x210   : > { %350 = vmax.xlane.f32.xlu0 %v349_v21 }
 0x29d   : > { %v351_v22 = vpop.xlane.xlu0 %350 }
 0x29e   : > { %v352_v23 = vsub.f32 %v344_v19, %v351_v22 }
 0x2a0   : > { %v353_v24 = vmul.f32 1.442695, %v352_v23 }
 0x2a2   : > { %562 = vpow2.f32 %v353_v24 }
 0x2ac   : > { %v563_v25 = vpop.eup %562 }
 0x2ad   : > { %v355_v26 = vsel %vm348_vm3, %v563_v25, 0.0 }
 0x2ae   : > { %356 = vadd.xlane.f32.xlu0 %v355_v26 }
 0x33b   : > { %v357_v27 = vpop.xlane.xlu0 %356 }
 0x33c   : > { %564 = vrcp.f32 %v357_v27 }
 0x346   : > { %v565_v28 = vpop.eup %564 }
 0x347   : > { %v359_v29 = vmul.f32 %v565_v28, %v563_v25 }
 0x349   : > { %360 = vst.msk [vmem:[%s172_s17] sm:$0x1] %vm348_vm3, %v359_v29 }
 0x34a   : > { %637 = shalt.err (!%p634_p7)
}
 0x34b   : > { %s638_s6 = scalar_lea.hbm %s880_s28, 16  ;;  %s642_s24 = scalar_lea.hbm %s927_s2, 32 }
 0x34c   : > { %p639_p9 = scmp.ne.s32.totalorder %s880_s28, %s638_s6  ;;  %p643_p0 = scmp.lt.u32.totalorder %s880_s28, %s927_s2 }
 0x34d   : > { %p644_p1 = scmp.lt.u32.totalorder %s642_s24, %s638_s6  ;;  %p646_p4 = scmp.lt.u32.totalorder %s638_s6, %s880_s28 }
 0x34e   : > { %p640_p2 = pnand %p639_p9, %p810_p12 }
 0x34f   : > { %p645_p11 = por %p644_p1, %p643_p0 }
 0x350   : > { %p641_p5 = pneg %p640_p2 }
 0x351   : > { %p647_p6 = por %p646_p4, %p645_p11 }
 0x353   : > { %p648_p8 = pnand %p647_p6, %p641_p5 }
 0x355   : > { %651 = shalt.err (!%p648_p8)
}
 0x356   : > { %506 = dma.vmem_to_hbm [thread:$0]  (%p810_p12), %s882_s27, 16, %s880_s28, %s362_s30  }
 0x357 PF: > { %s386_s26 = sand.u32 1, %s682_s9   ;;  %p942_p10 = scmp.ne.s32.totalorder %s932_s16, 0 }
 0x358   : > { %p943_p13 = scmp.ge.s32.totalorder %s694_s12, 2  ;;  %s387_s19 = scalar_lea.sflag [#allocation4], %s386_s26 }
 0x35a   : > { %p517_p3 = pnand %p943_p13, %p942_p10 }
 0x35c   : > { %677 = dma.done.wait (!%p517_p3), %s387_s19, 16  }
 0x35d   : > { %679 = vsyncadd (!%p517_p3), %s387_s19, 4294967280  ;;  %p16_p7 = scmp.ge.s32.totalorder %s775_s21, 4   ;;  %s944_s9 = smov %s686_s10 }
 0x35e   : > { %s945_s10 = smov %s690_s11  ;;  %s946_s11 = smov %s806_s8 }
 0x35f   : > { %s947_s12 = smov %s775_s21  ;;  %18 = sbr.rel (!%p16_p7) target bundleno = 6 (0x6), region = 77 }
 0x366   :  { %391 = vsyncpa [#allocation3], 1 }
 0x367   :  { %393 = vsyncpa [#allocation3 + $0x1], 1 }
 0x368   :  { %394 = vsyncpa [#allocation6], 1 }
 0x369   :  { %395 = vsyncpa [#allocation4], 1 }
 0x36a   :  { %397 = vsyncpa [#allocation4 + $0x1], 1 }

</bundles_post_ra>
